<compile_context>
chip_gen: v7x
topology: tpu7x:2x2x1
jax: 0.10.0
libtpu: 0.0.40
codegen_flags: <defaults>
</compile_context>

<pallas_src>
import functools

import jax
import jax.numpy as jnp
from jax import lax
from jax.experimental import pallas as pl
from jax.experimental.pallas import tpu as pltpu

HIDDEN_SIZE = 64
KAPPA = 8
INPUT_SIZE = KAPPA + 1        # 9
IN_AUG = INPUT_SIZE + 1       # 10: ones-row appended so b1 folds into W1
OUTPUT_SIZE = 1


def _round_up(a, m):
    return ((a + m - 1) // m) * m


def _critic_kernel(xT_ref, w1_ref, w2_ref, b2_ref, o_ref, *, chunk):
    """One batch tile, batch on the lane axis:  o = W2 @ relu(W1_aug @ x_aug^T) + b2.

    The DMA'd block is (IN_AUG, TB); compute walks lane sub-chunks of `chunk` so the
    f32 hidden intermediate is only (HIDDEN, chunk), independent of the DMA tile size.
    """
    tb = o_ref.shape[-1]
    n_chunks = tb // chunk                     # static

    w1 = w1_ref[...]                           # (H, IN_AUG), compute dtype (b1 folded in)
    w2 = w2_ref[...]                           # (1, H), f32 -> no cast on the hidden
    b2 = b2_ref[0]                             # scalar from SMEM

    def step(start):
        xc = xT_ref[:, pl.ds(start, chunk)]                              # (IN_AUG, chunk)
        h = jnp.dot(w1, xc, preferred_element_type=jnp.float32)          # MXU, f32 acc
        h = jnp.maximum(h, 0.0)                                          # ReLU on VPU
        y = jnp.dot(w2, h, preferred_element_type=jnp.float32)           # (1, chunk), f32
        o_ref[:, pl.ds(start, chunk)] = (y + b2).astype(o_ref.dtype)     # lane-dense store

    if n_chunks <= 8:
        # Short, statically known trip count: unroll for LLO scheduler visibility.
        for c in range(n_chunks):
            step(c * chunk)
    else:
        def body(c, carry):
            step(pl.multiple_of(c * chunk, chunk))
            return carry
        lax.fori_loop(0, n_chunks, body, 0)


@functools.partial(
    jax.jit,
    static_argnames=("block_b", "chunk_b", "compute_dtype", "vmem_limit_bytes"))
def critic_forward(x, w1, b1, w2, b2, *, block_b=128 * 1024, chunk_b=2048,
                   compute_dtype=jnp.bfloat16, vmem_limit_bytes=48 * 1024 * 1024):
    """Forward pass equivalent to the PyTorch Critic.

    Args:
      x:  (B, INPUT_SIZE) activations.
      w1: (HIDDEN_SIZE, INPUT_SIZE)   -- PyTorch nn.Linear weight layout.
      b1: (HIDDEN_SIZE,)
      w2: (OUTPUT_SIZE, HIDDEN_SIZE)  -- PyTorch nn.Linear weight layout.
      b2: (OUTPUT_SIZE,)
    Returns:
      (B, OUTPUT_SIZE) float32, equal to relu(x @ W1.T + b1) @ W2.T + b2.
    """
    B = x.shape[0]
    assert x.shape[1] == INPUT_SIZE

    # ---- static tile sizing ---------------------------------------------------
    b128 = _round_up(B, 128)
    chunk = _round_up(min(chunk_b, b128), 128)        # lane sub-chunk (multiple of 128)
    tb = _round_up(min(block_b, b128), chunk)         # DMA tile over batch lanes
    # Prefer >= 2 grid steps when the batch allows it: v7x shards the "parallel"
    # grid axis across its two TensorCores (harmless no-op on v5e/v6e).
    if tb > chunk and _round_up(B, tb) // tb < 2:
        half = _round_up(tb // 2, chunk)
        if _round_up(B, half) // half >= 2:
            tb = half
    b_pad = _round_up(B, tb)
    grid = (b_pad // tb,)

    # ---- operand prep (one fused relayout pass over x) -------------------------
    # If the caller can keep x in (INPUT_SIZE, B) layout across calls, this pass
    # disappears entirely; only the tail tile is ever padded.
    xT = x.astype(compute_dtype).T                                        # (IN, B)
    xT_aug = jnp.concatenate([xT, jnp.ones((1, B), compute_dtype)], 0)    # (IN_AUG, B)
    if b_pad != B:
        xT_aug = jnp.pad(xT_aug, ((0, 0), (0, b_pad - B)))                # tail only

    w1_aug = jnp.concatenate([w1, b1[:, None]], axis=1).astype(compute_dtype)  # (H, 10)
    w2_f32 = w2.astype(jnp.float32)                                       # (1, H)
    b2_f32 = b2.astype(jnp.float32).reshape(OUTPUT_SIZE)                  # SMEM scalar

    cost = pl.CostEstimate(
        flops=2 * b_pad * IN_AUG * HIDDEN_SIZE + 2 * b_pad * HIDDEN_SIZE * OUTPUT_SIZE,
        transcendentals=0,
        bytes_accessed=(xT_aug.size * xT_aug.dtype.itemsize
                        + w1_aug.size * w1_aug.dtype.itemsize
                        + w2_f32.size * 4 + b2_f32.size * 4
                        + b_pad * OUTPUT_SIZE * 4),
    )

    out = pl.pallas_call(
        functools.partial(_critic_kernel, chunk=chunk),
        out_shape=jax.ShapeDtypeStruct((OUTPUT_SIZE, b_pad), jnp.float32),
        grid=grid,
        in_specs=[
            pl.BlockSpec((IN_AUG, tb), lambda i: (0, i)),                 # x_aug^T tile
            pl.BlockSpec((HIDDEN_SIZE, IN_AUG), lambda i: (0, 0)),        # W1|b1 resident
            pl.BlockSpec((OUTPUT_SIZE, HIDDEN_SIZE), lambda i: (0, 0)),   # W2 resident
            pl.BlockSpec(memory_space=pltpu.MemorySpace.SMEM),            # b2 scalar
        ],
        out_specs=pl.BlockSpec((OUTPUT_SIZE, tb), lambda i: (0, i)),      # lane-dense out
        compiler_params=pltpu.CompilerParams(
            dimension_semantics=("parallel",),
            vmem_limit_bytes=vmem_limit_bytes),
        cost_estimate=cost,
    )(xT_aug, w1_aug, w2_f32, b2_f32)

    return out[:, :B].T                                                   # (B, 1) f32


def init_params(key):
    # Deterministic synthetic init (uniform, PyTorch nn.Linear layout and scale).
    k1, k2, k3, k4 = jax.random.split(key, 4)
    bound1 = 1.0 / jnp.sqrt(INPUT_SIZE)
    bound2 = 1.0 / jnp.sqrt(HIDDEN_SIZE)
    w1 = jax.random.uniform(k1, (HIDDEN_SIZE, INPUT_SIZE), jnp.float32, -bound1, bound1)
    b1 = jax.random.uniform(k2, (HIDDEN_SIZE,), jnp.float32, -bound1, bound1)
    w2 = jax.random.uniform(k3, (OUTPUT_SIZE, HIDDEN_SIZE), jnp.float32, -bound2, bound2)
    b2 = jax.random.uniform(k4, (OUTPUT_SIZE,), jnp.float32, -bound2, bound2)
    return w1, b1, w2, b2


if __name__ == "__main__":
    key = jax.random.PRNGKey(0)
    kx, kp = jax.random.split(key)

    B = 520  # small; not a multiple of 128 -> exercises the padded tail tile
    x = jax.random.normal(kx, (B, INPUT_SIZE), jnp.float32)
    w1, b1, w2, b2 = init_params(kp)

    # Pure-JAX reference with PyTorch semantics: y = relu(x @ W1.T + b1) @ W2.T + b2.
    ref = jnp.maximum(x @ w1.T + b1, 0.0) @ w2.T + b2

    # 1) f32 compute path, single tile / single chunk: tight match.
    out_f32 = jax.block_until_ready(
        critic_forward(x, w1, b1, w2, b2, compute_dtype=jnp.float32))
    assert out_f32.shape == (B, OUTPUT_SIZE)
    assert jnp.allclose(out_f32, ref, atol=1e-4, rtol=1e-4)

    # 2) Forced small tiles: 3 batch tiles x 2 lane chunks each -- exercises the
    #    BlockSpec pipeline and the in-kernel chunk loop at tiny shapes.
    out_tiled = jax.block_until_ready(
        critic_forward(x, w1, b1, w2, b2,
                       block_b=256, chunk_b=128, compute_dtype=jnp.float32))
    assert jnp.allclose(out_tiled, ref, atol=1e-4, rtol=1e-4)

    # 3) Default bf16-input / f32-accumulate path: looser tolerance (bf16 rounding).
    out_bf16 = jax.block_until_ready(critic_forward(x, w1, b1, w2, b2))
    assert out_bf16.shape == (B, OUTPUT_SIZE)
    assert jnp.allclose(out_bf16, ref, atol=5e-2, rtol=5e-2)

    print("KERNEL_OK")
</pallas_src>

<mosaic_0001>
module attributes {stable_mosaic.version = 11 : i64} {
  func.func @_critic_kernel(%arg0: i32, %arg1: memref<10x640xf32, #tpu.memory_space<vmem>>, %arg2: memref<64x10xf32, #tpu.memory_space<vmem>>, %arg3: memref<1x64xf32, #tpu.memory_space<vmem>>, %arg4: memref<1xf32, #tpu.memory_space<smem>>, %arg5: memref<1x640xf32, #tpu.memory_space<vmem>>) attributes {dimension_semantics = [#tpu.dimension_semantics<parallel>], iteration_bounds = array<i64: 1>, scalar_prefetch = 0 : i64, scratch_operands = 0 : i64, tpu.core_type = #tpu.core_type<tc>, window_params = [{transform_indices = @transform_0, window_bounds = array<i64: 10, 640>}, {pipeline_mode = #tpu.pipeline_mode<synchronous>, transform_indices = @transform_1, window_bounds = array<i64: 64, 10>}, {pipeline_mode = #tpu.pipeline_mode<synchronous>, transform_indices = @transform_2, window_bounds = array<i64: 1, 64>}, {transform_indices = @transform_3, window_bounds = array<i64: 1>}, {transform_indices = @transform_4, window_bounds = array<i64: 1, 640>}]} {
    %c0 = arith.constant 0 : index
    %c0_0 = arith.constant 0 : index
    %0 = vector.load %arg2[%c0, %c0_0] : memref<64x10xf32, #tpu.memory_space<vmem>>, vector<64x10xf32>
    %c0_1 = arith.constant 0 : index
    %c0_2 = arith.constant 0 : index
    %1 = vector.load %arg3[%c0_1, %c0_2] : memref<1x64xf32, #tpu.memory_space<vmem>>, vector<1x64xf32>
    %c0_3 = arith.constant 0 : index
    %2 = memref.load %arg4[%c0_3] : memref<1xf32, #tpu.memory_space<smem>>
    %c0_4 = arith.constant 0 : index
    %c0_5 = arith.constant 0 : index
    %3 = vector.load %arg1[%c0_4, %c0_5] : memref<10x640xf32, #tpu.memory_space<vmem>>, vector<10x640xf32>
    %cst = arith.constant dense<0.000000e+00> : vector<64x640xf32>
    %4 = tpu.matmul %0, %3, %cst {dimension_numbers = #tpu.dot_dimension_numbers<[1], [0], [0], [1], [0, 0, 1, 1], [], []>} : vector<64x10xf32>, vector<10x640xf32>, vector<64x640xf32> -> vector<64x640xf32>
    %cst_6 = arith.constant 0.000000e+00 : f32
    %5 = vector.broadcast %cst_6 : f32 to vector<64x640xf32>
    %6 = arith.maximumf %4, %5 : vector<64x640xf32>
    %cst_7 = arith.constant dense<0.000000e+00> : vector<1x640xf32>
    %7 = tpu.matmul %1, %6, %cst_7 {dimension_numbers = #tpu.dot_dimension_numbers<[1], [0], [0], [1], [0, 0, 1, 1], [], []>} : vector<1x64xf32>, vector<64x640xf32>, vector<1x640xf32> -> vector<1x640xf32>
    %8 = vector.broadcast %2 : f32 to vector<1x640xf32>
    %9 = arith.addf %7, %8 : vector<1x640xf32>
    %c0_8 = arith.constant 0 : index
    %c0_9 = arith.constant 0 : index
    %10 = vector.load %arg5[%c0_8, %c0_9] : memref<1x640xf32, #tpu.memory_space<vmem>>, vector<1x640xf32>
    tpu.vector_store %arg5[%c0_8, %c0_9], %9 {strides = array<i32>} : memref<1x640xf32, #tpu.memory_space<vmem>>, vector<1x640xf32>,
    return
  }
  func.func @transform_0(%arg0: i32) -> (i32, i32) {
    %c0_i32 = arith.constant 0 : i32
    %c0_i32_0 = arith.constant 0 : i32
    return %c0_i32, %arg0 : i32, i32
  }
  func.func @transform_1(%arg0: i32) -> (i32, i32) {
    %c0_i32 = arith.constant 0 : i32
    %c0_i32_0 = arith.constant 0 : i32
    %c0_i32_1 = arith.constant 0 : i32
    return %c0_i32, %c0_i32_0 : i32, i32
  }
  func.func @transform_2(%arg0: i32) -> (i32, i32) {
    %c0_i32 = arith.constant 0 : i32
    %c0_i32_0 = arith.constant 0 : i32
    %c0_i32_1 = arith.constant 0 : i32
    return %c0_i32, %c0_i32_0 : i32, i32
  }
  func.func @transform_3(%arg0: i32) -> i32 {
    %c0_i32 = arith.constant 0 : i32
    %c0_i32_0 = arith.constant 0 : i32
    return %c0_i32 : i32
  }
  func.func @transform_4(%arg0: i32) -> (i32, i32) {
    %c0_i32 = arith.constant 0 : i32
    %c0_i32_0 = arith.constant 0 : i32
    return %c0_i32, %arg0 : i32, i32
  }
}

</mosaic_0001>

<bundles_post_ra>
// kernel: critic_forward.1
= control target key start
LH: loop header
LB: loop body
LE: loop exit
PB: predicated region body
PF: predicated region fallthrough
CT: control target
= control target key end

     0   :  { %vm63_vm0 = vcmask 1041408   ;;  %vm874_vm1 = vmmov 1   ;;  %v875_v3 = vmov 0.0   ;;  %vm38_vm3 = vcmask 80896   ;;  %s1029_s0 = inlined_call_operand.vmem [shape: f32[10,640], index: 0, kind: input, shape index: {}]   ;;  %s1030_s1 = inlined_call_operand.vmem [shape: f32[64,10], index: 1, kind: input, shape index: {}]   ;;  %s1031_s2 = inlined_call_operand.vmem [shape: f32[1,64], index: 2, kind: input, shape index: {}]   ;;  %s1032_s3 = inlined_call_operand.<no memory space> [shape: f32[1], index: 3, kind: input, shape index: {}]   ;;  %s1033_s4 = inlined_call_operand.vmem [shape: f32[1,640], index: 4, kind: output, shape index: {}]  }
   0x1   :  { %v29_v0 = vld [vmem:[%s1029_s0 + $0x8] sm:$0xff]  ;;  %v34_v1 = vld [vmem:[%s1029_s0 + $0x30] sm:$0x3]  ;;  %vm910_vm2 = vmpackc.low %vm63_vm0, %vm874_vm1  ;;  %143 = vmatprep.mubr.f32.mxu0 %v875_v3  ;;  %256 = vmatprep.mubr.f32.mxu1 %v875_v3  ;;  %vm451_vm4 = vcmask 523264   ;;  %vm877_vm5 = vmmov 0  }
   0x2   :  { %v807_v4 = vpack.c.bf16 %v34_v1, %v29_v0  ;;  %v28_v5 = vld [vmem:[%s1029_s0] sm:$0xff]  ;;  %v33_v6 = vld [vmem:[%s1029_s0 + $0x28] sm:$0x3]  ;;  %v31_v8 = vld [vmem:[%s1029_s0 + $0x18] sm:$0xff] }
   0x3   :  { %v810_v7 = vpack.c.bf16 %v33_v6, %v28_v5  ;;  %v36_v9 = vld [vmem:[%s1029_s0 + $0x40] sm:$0x3]  ;;  %v30_v10 = vld [vmem:[%s1029_s0 + $0x10] sm:$0xff]  ;;  %v35_v12 = vld [vmem:[%s1029_s0 + $0x38] sm:$0x3] }
   0x4   :  { %809 = vmatprep.subr.msk.bf16.mxu0 %vm910_vm2, %v807_v4  ;;  %v813_v11 = vpack.c.bf16 %v36_v9, %v31_v8  ;;  %v32_v13 = vld [vmem:[%s1029_s0 + $0x20] sm:$0xff]  ;;  %v816_v15 = vpack.c.bf16 %v35_v12, %v30_v10  ;;  %v37_v16 = vld [vmem:[%s1029_s0 + $0x48] sm:$0x3]  ;;  %v20_v19 = vld [vmem:[%s1030_s1 + $0x10] sm:$0xff] }
   0x5   :  { %812 = vmatpush1.bf16.msk.msra.mxu0 %vm910_vm2, %v810_v7  ;;  %v18_v14 = vld [vmem:[%s1030_s1] sm:$0xff]  ;;  %v819_v17 = vpack.c.bf16 %v37_v16, %v32_v13  ;;  %v19_v18 = vld [vmem:[%s1030_s1 + $0x8] sm:$0xff]  ;;  %v21_v20 = vld [vmem:[%s1030_s1 + $0x18] sm:$0xff] }
   0x6   :  { %815 = vmatprep.subr.msk.bf16.mxu1 %vm910_vm2, %v813_v11  ;;  %v22_v21 = vld [vmem:[%s1030_s1 + $0x20] sm:$0xff]  ;;  %v23_v22 = vld [vmem:[%s1030_s1 + $0x28] sm:$0xff]  ;;  %v24_v23 = vld [vmem:[%s1030_s1 + $0x30] sm:$0xff] }
   0x7   :  { %818 = vmatpush1.bf16.msk.msra.mxu1 %vm910_vm2, %v816_v15  ;;  %821 = vmatprep.subr.msk.bf16.mxu0 %vm910_vm2, %v819_v17  ;;  %v25_v24 = vld [vmem:[%s1030_s1 + $0x38] sm:$0xff] }
   0x8   :  { %723 = vmatmul.mubr.msk.f32.vlgmr.msra.gmra.mrb[0].mxu0 %vm38_vm3, %v18_v14 }
   0x9   :  { %149 = vmatprep.mubr.f32.mxu0 %v875_v3  ;;  %824 = vmatpush3.bf16.msk.msra.mxu0 %vm910_vm2, %v819_v17 }
   0xa   :  { %733 = vmatmul.mubr.msk.f32.vlgmr.msra.gmra.mrb[0].mxu1 %vm38_vm3, %v18_v14 }
   0xb   :  { %262 = vmatprep.mubr.f32.mxu1 %v875_v3 }
   0xc   :  { %724 = vmatmul.mubr.msk.f32.gmra.mrb[2].mxu0 %vm38_vm3, %v19_v18 }
   0xd   :  { %155 = vmatprep.mubr.f32.mxu0 %v875_v3 }
   0xe   :  { %734 = vmatmul.mubr.msk.f32.gmra.mrb[2].mxu1 %vm38_vm3, %v19_v18 }
   0xf   :  { %268 = vmatprep.mubr.f32.mxu1 %v875_v3 }
  0x10   :  { %725 = vmatmul.mubr.msk.f32.gmra.mrb[4].mxu0 %vm38_vm3, %v20_v19 }
  0x11   :  { %161 = vmatprep.mubr.f32.mxu0 %v875_v3 }
  0x12   :  { %735 = vmatmul.mubr.msk.f32.gmra.mrb[4].mxu1 %vm38_vm3, %v20_v19 }
  0x13   :  { %274 = vmatprep.mubr.f32.mxu1 %v875_v3 }
  0x14   :  { %726 = vmatmul.mubr.msk.f32.gmra.mrb[6].mxu0 %vm38_vm3, %v21_v20 }
  0x15   :  { %167 = vmatprep.mubr.f32.mxu0 %v875_v3 }
  0x16   :  { %736 = vmatmul.mubr.msk.f32.gmra.mrb[6].mxu1 %vm38_vm3, %v21_v20 }
  0x17   :  { %280 = vmatprep.mubr.f32.mxu1 %v875_v3 }
  0x18   :  { %727 = vmatmul.mubr.msk.f32.gmra.mrb[8].mxu0 %vm38_vm3, %v22_v21 }
  0x19   :  { %173 = vmatprep.mubr.f32.mxu0 %v875_v3 }
  0x1a   :  { %737 = vmatmul.mubr.msk.f32.gmra.mrb[8].mxu1 %vm38_vm3, %v22_v21 }
  0x1b   :  { %286 = vmatprep.mubr.f32.mxu1 %v875_v3 }
  0x1c   :  { %728 = vmatmul.mubr.msk.f32.gmra.mrb[10].mxu0 %vm38_vm3, %v23_v22 }
  0x1d   :  { %179 = vmatprep.mubr.f32.mxu0 %v875_v3 }
  0x1e   :  { %738 = vmatmul.mubr.msk.f32.gmra.mrb[10].mxu1 %vm38_vm3, %v23_v22 }
  0x1f   :  { %292 = vmatprep.mubr.f32.mxu1 %v875_v3 }
  0x20   :  { %729 = vmatmul.mubr.msk.f32.gmra.mrb[12].mxu0 %vm38_vm3, %v24_v23 }
  0x21   :  { %185 = vmatprep.mubr.f32.mxu0 %v875_v3 }
  0x22   :  { %739 = vmatmul.mubr.msk.f32.gmra.mrb[12].mxu1 %vm38_vm3, %v24_v23 }
  0x23   :  { %298 = vmatprep.mubr.f32.mxu1 %v875_v3 }
  0x24   :  { %730 = vmatmul.mubr.msk.f32.gmra.mrb[14].mxu0 %vm38_vm3, %v25_v24 }
  0x25   :  { %776 = vmatprep.mubr.msk.f32.mxu0 %vm38_vm3, %v18_v14 }
  0x26   :  { %740 = vmatmul.mubr.msk.f32.gmra.mrb[14].mxu1 %vm38_vm3, %v25_v24 }
  0x27   :  { %519 = vmatprep.mubr.f32.mxu1 %v875_v3 }
  0x28   :  { %777 = vmatmul.mubr.msk.f32.vlgmr.msra.gmra.mrb[16].mxu0 %vm38_vm3, %v19_v18 }
  0x29   :  { %779 = vmatprep.mubr.msk.f32.mxu0 %vm38_vm3, %v20_v19 }
  0x2c   :  { %780 = vmatmul.mubr.msk.f32.gmra.mrb[18].mxu0 %vm38_vm3, %v21_v20 }
  0x2d   :  { %782 = vmatprep.mubr.msk.f32.mxu0 %vm38_vm3, %v22_v21 }
  0x30   :  { %783 = vmatmul.mubr.msk.f32.gmra.mrb[20].mxu0 %vm38_vm3, %v23_v22 }
  0x31   :  { %785 = vmatprep.mubr.msk.f32.mxu0 %vm38_vm3, %v24_v23 }
  0x34   :  { %786 = vmatmul.mubr.msk.f32.gmra.mrb[22].mxu0 %vm38_vm3, %v25_v24 }
  0x35   :  { %590 = vmatprep.mubr.f32.mxu0 %v875_v3 }
  0xdb   :  { %v145_v25 = vpop.f32.mrb[0].mxu0 }
  0xdc   :  { %v147_v26 = vpop.f32.mrb[1].mxu0  ;;  %v410_v30 = vmax.f32 %v145_v25, 0.0 }
  0xdd   :  { %v258_v27 = vpop.f32.mrb[0].mxu1  ;;  %v411_v34 = vmax.f32 %v147_v26, 0.0 }
  0xde   :  { %v260_v28 = vpop.f32.mrb[1].mxu1  ;;  %v412_v33 = vmax.f32 %v258_v27, 0.0 }
  0xdf   :  { %v151_v29 = vpop.f32.mrb[2].mxu0  ;;  %v413_v36 = vmax.f32 %v260_v28, 0.0 }
  0xe0   :  { %v415_v31 = vmax.f32 %v151_v29, 0.0  ;;  %v153_v32 = vpop.f32.mrb[3].mxu0 }
  0xe1   :  { %v416_v35 = vmax.f32 %v153_v32, 0.0  ;;  %v264_v37 = vpop.f32.mrb[2].mxu1 }
  0xe2   :  { %v827_v38 = vpack.c.bf16 %v415_v31, %v410_v30  ;;  %v417_v39 = vmax.f32 %v264_v37, 0.0  ;;  %v266_v40 = vpop.f32.mrb[3].mxu1 }
  0xe3   :  { %v825_v41 = vpack.c.bf16 %v416_v35, %v411_v34  ;;  %v157_v42 = vpop.f32.mrb[4].mxu0  ;;  %v418_v43 = vmax.f32 %v266_v40, 0.0 }
  0xe4   :  { %v159_v44 = vpop.f32.mrb[5].mxu0  ;;  %v843_v45 = vpack.c.bf16 %v417_v39, %v412_v33  ;;  %v420_v50 = vmax.f32 %v157_v42, 0.0 }
  0xe5   :  { %826 = vmatprep.subr.bf16.mxu1 %v825_v41  ;;  %v841_v46 = vpack.c.bf16 %v418_v43, %v413_v36  ;;  %v270_v47 = vpop.f32.mrb[4].mxu1  ;;  %v421_v54 = vmax.f32 %v159_v44, 0.0 }
  0xe6   :  { %828 = vmatpush1.bf16.msra.mxu1 %v827_v38  ;;  %v272_v48 = vpop.f32.mrb[5].mxu1  ;;  %v422_v53 = vmax.f32 %v270_v47, 0.0 }
  0xe7   :  { %v163_v49 = vpop.f32.mrb[6].mxu0  ;;  %842 = vmatprep.subr.bf16.mxu0 %v841_v46  ;;  %v423_v56 = vmax.f32 %v272_v48, 0.0  ;;  %v26_v46 = vld [vmem:[%s1031_s2] sm:$0x1] }
  0xe8   :  { %v425_v51 = vmax.f32 %v163_v49, 0.0  ;;  %v165_v52 = vpop.f32.mrb[7].mxu0  ;;  %844 = vmatpush1.bf16.msra.mxu0 %v843_v45  ;;  %v876_v49 = vmov 0.0|0.0  }
  0xe9   :  { %v426_v55 = vmax.f32 %v165_v52, 0.0  ;;  %v276_v57 = vpop.f32.mrb[6].mxu1 }
  0xea   :  { %v831_v58 = vpack.c.bf16 %v425_v51, %v420_v50  ;;  %v427_v59 = vmax.f32 %v276_v57, 0.0  ;;  %v278_v60 = vpop.f32.mrb[7].mxu1 }
  0xeb   :  { %v829_v61 = vpack.c.bf16 %v426_v55, %v421_v54  ;;  %v169_v62 = vpop.f32.mrb[8].mxu0  ;;  %v428_v63 = vmax.f32 %v278_v60, 0.0 }
  0xec   :  { %v171_v0 = vpop.f32.mrb[9].mxu0  ;;  %v847_v1 = vpack.c.bf16 %v427_v59, %v422_v53  ;;  %v430_v7 = vmax.f32 %v169_v62, 0.0 }
  0xed   :  { %830 = vmatprep.subr.bf16.mxu1 %v829_v61  ;;  %v845_v2 = vpack.c.bf16 %v428_v63, %v423_v56  ;;  %v282_v4 = vpop.f32.mrb[8].mxu1  ;;  %v431_v11 = vmax.f32 %v171_v0, 0.0 }
  0xee   :  { %832 = vmatpush1.bf16.msra.mxu1 %v831_v58  ;;  %v284_v5 = vpop.f32.mrb[9].mxu1  ;;  %v432_v10 = vmax.f32 %v282_v4, 0.0 }
  0xef   :  { %v175_v6 = vpop.f32.mrb[10].mxu0  ;;  %846 = vmatprep.subr.bf16.mxu0 %v845_v2  ;;  %v433_v13 = vmax.f32 %v284_v5, 0.0  ;;  %v450_v2 = vstv %s1032_s3 }
  0xf0   :  { %v435_v8 = vmax.f32 %v175_v6, 0.0  ;;  %v177_v9 = vpop.f32.mrb[11].mxu0  ;;  %848 = vmatpush1.bf16.msra.mxu0 %v847_v1  ;;  %v677_v1 = vlaneseq }
  0xf1   :  { %v436_v12 = vmax.f32 %v177_v9, 0.0  ;;  %v288_v14 = vpop.f32.mrb[10].mxu1 }
  0xf2   :  { %v835_v15 = vpack.c.bf16 %v435_v8, %v430_v7  ;;  %v437_v16 = vmax.f32 %v288_v14, 0.0  ;;  %v290_v17 = vpop.f32.mrb[11].mxu1  ;;  %v678_v5 = vshrl.u32 %v677_v1, 7  ;;  %vm714_vm6 = vcmp.lt.s32.totalorder %v677_v1, 640 }
  0xf3   :  { %v833_v18 = vpack.c.bf16 %v436_v12, %v431_v11  ;;  %v181_v19 = vpop.f32.mrb[12].mxu0  ;;  %v438_v20 = vmax.f32 %v290_v17, 0.0 }
  0xf4   :  { %v183_v21 = vpop.f32.mrb[13].mxu0  ;;  %v851_v22 = vpack.c.bf16 %v437_v16, %v432_v10  ;;  %v440_v27 = vmax.f32 %v181_v19, 0.0 }
  0xf5   :  { %834 = vmatprep.subr.bf16.mxu1 %v833_v18  ;;  %v849_v23 = vpack.c.bf16 %v438_v20, %v433_v13  ;;  %v294_v24 = vpop.f32.mrb[12].mxu1  ;;  %v441_v31 = vmax.f32 %v183_v21, 0.0 }
  0xf6   :  { %836 = vmatpush1.bf16.msra.mxu1 %v835_v15  ;;  %v296_v25 = vpop.f32.mrb[13].mxu1  ;;  %v442_v30 = vmax.f32 %v294_v24, 0.0 }
  0xf7   :  { %v187_v26 = vpop.f32.mrb[14].mxu0  ;;  %850 = vmatprep.subr.bf16.mxu0 %v849_v23  ;;  %v443_v33 = vmax.f32 %v296_v25, 0.0 }
  0xf8   :  { %v445_v28 = vmax.f32 %v187_v26, 0.0  ;;  %v189_v29 = vpop.f32.mrb[15].mxu0  ;;  %852 = vmatpush1.bf16.msra.mxu0 %v851_v22 }
  0xf9   :  { %v446_v32 = vmax.f32 %v189_v29, 0.0  ;;  %v300_v34 = vpop.f32.mrb[14].mxu1 }
  0xfa   :  { %v839_v35 = vpack.c.bf16 %v445_v28, %v440_v27  ;;  %v447_v36 = vmax.f32 %v300_v34, 0.0  ;;  %v302_v37 = vpop.f32.mrb[15].mxu1 }
  0xfb   :  { %v837_v38 = vpack.c.bf16 %v446_v32, %v441_v31  ;;  %v448_v39 = vmax.f32 %v302_v37, 0.0  ;;  %v778_v40 = vpop.f32.mrb[16].mxu0 }
  0xfc   :  { %v855_v41 = vpack.c.bf16 %v447_v36, %v442_v30  ;;  %v419_v42 = vmax.f32 %v778_v40, 0.0  ;;  %v371_v43 = vpop.f32.mrb[17].mxu0 }
  0xfd   :  { %v853_v44 = vpack.c.bf16 %v448_v39, %v443_v33  ;;  %v414_v45 = vmax.f32 %v371_v43, 0.0  ;;  %838 = vmatprep.subr.bf16.mxu1 %v837_v38 }
  0xfe   :  { %840 = vmatpush1.bf16.msra.mxu1 %v839_v35 }
  0xff   :  { %v858_v47 = vpack.c.bf16 %v419_v42, %v414_v45  ;;  %v781_v48 = vpop.f32.mrb[18].mxu0  ;;  %854 = vmatprep.subr.bf16.mxu0 %v853_v44  ;;  %857 = vmatprep.subr.bf16.mxu1 %v876_v49 }
 0x100   :  { %v429_v50 = vmax.f32 %v781_v48, 0.0  ;;  %v381_v51 = vpop.f32.mrb[19].mxu0  ;;  %856 = vmatpush1.bf16.msra.mxu0 %v855_v41 }
 0x101   :  { %v424_v52 = vmax.f32 %v381_v51, 0.0  ;;  %750 = vmatmul.mubr.msk.f32.vlgmr.msra.gmra.mrb[16].mxu1 %vm451_vm4, %v26_v46 }
 0x102   :  { %859 = vmatpush3.bf16.msra.mxu1 %v858_v47  ;;  %804 = vmatprep.mubr.msk.f32.mxu1 %vm877_vm5, %v875_v3  ;;  %v878_v3 = vmov 1966171168  }
 0x103   :  { %v861_v53 = vpack.c.bf16 %v429_v50, %v424_v52  ;;  %v784_v54 = vpop.f32.mrb[20].mxu0  ;;  %751 = vmatmul.mubr.msk.f32.vlgmr.msra.gmra.mrb[24].mxu0 %vm451_vm4, %v26_v46  ;;  %860 = vmatprep.subr.bf16.mxu1 %v876_v49  ;;  %v675_v0 = vunpack.c.l.s4 %v878_v3 }
 0x104   :  { %v439_v55 = vmax.f32 %v784_v54, 0.0  ;;  %v391_v56 = vpop.f32.mrb[21].mxu0 }
 0x105   :  { %v434_v57 = vmax.f32 %v391_v56, 0.0  ;;  %v676_v4 = vunpack.c.0.s8 %v675_v0 }
 0x106   :  { %862 = vmatpush3.bf16.msra.mxu1 %v861_v53 }
 0x107   :  { %v864_v58 = vpack.c.bf16 %v439_v55, %v434_v57  ;;  %v787_v59 = vpop.f32.mrb[22].mxu0  ;;  %863 = vmatprep.subr.bf16.mxu1 %v876_v49  ;;  %v679_v11 = vsub.s32 %v676_v4, %v678_v5 }
 0x108   :  { %v449_v60 = vmax.f32 %v787_v59, 0.0  ;;  %v401_v61 = vpop.f32.mrb[23].mxu0 }
 0x109   :  { %v444_v62 = vmax.f32 %v401_v61, 0.0 }
 0x10a   :  { %865 = vmatpush3.bf16.msra.mxu1 %v864_v58 }
 0x10b   :  { %v867_v63 = vpack.c.bf16 %v449_v60, %v444_v62  ;;  %866 = vmatprep.subr.bf16.mxu1 %v876_v49 }
 0x10e   :  { %868 = vmatpush3.bf16.msra.mxu1 %v867_v63 }
 0x111   :  { %805 = vmatmul.mubr.msk.f32.vlgmr.msra.gmra.mrb[18].mxu1 %vm451_vm4, %v26_v46 }
 0x1d4   :  { %v521_v6 = vpop.f32.mrb[16].mxu1 }
 0x1d5   :  { %v522_v7 = vadd.f32 %v521_v6, %v450_v2  ;;  %v523_v8 = vpop.f32.mrb[17].mxu1 }
 0x1d6   :  { %v592_v9 = vpop.f32.mrb[24].mxu0  ;;  %v524_v10 = vadd.f32 %v523_v8, %v450_v2 }
 0x1d7   :  { %v593_v12 = vadd.f32 %v592_v9, %v450_v2  ;;  %v594_v13 = vpop.f32.mrb[25].mxu0 }
 0x1d8   :  { %v672_v14 = vcombine.low %v522_v7, %v524_v10  ;;  %v595_v15 = vadd.f32 %v594_v13, %v450_v2 }
 0x1da   :  { %v680_v16 = vrot.slane %v672_v14, %v679_v11  ;;  %v673_v17 = vcombine.low %v593_v12, %v595_v15 }
 0x1dc   :  { %v687_v18 = vrot.slane %v673_v17, %v679_v11 }
 0x1de   :  { %v695_v19 = vcombine.low %v680_v16, %v687_v18 }
 0x1e0   :  { %v702_v24 = vrot.slane %v695_v19, %v679_v11 }
 0x1e4   :  { %v663_v20 = vpop.f32.mrb[18].mxu1 }
 0x1e5   :  { %v664_v21 = vadd.f32 %v663_v20, %v450_v2  ;;  %v806_v22 = vpop.f32.mrb[19].mxu1 }
 0x1e7   :  { %v694_v23 = vrot.slane %v664_v21, %v679_v11 }
 0x1e9   :  { %v709_v25 = vrot.slane %v694_v23, %v679_v11 }
 0x1eb   :  { %v710_v26 = vcombine.low %v702_v24, %v709_v25 }
 0x1ed   :  { %716 = vst.msk [vmem:[%s1033_s4] sm:$0x1f] %vm714_vm6, %v710_v26 }

</bundles_post_ra>
